<compile_context>
chip_gen: v5e
topology: v5e:2x2
jax: 0.10.0
libtpu: 0.0.40
codegen_flags: <defaults>
</compile_context>

<pallas_src>
import functools

import jax
import jax.numpy as jnp
from jax.experimental import pallas as pl
from jax.experimental.pallas import tpu as pltpu


def mlp_kernel(x_ref, w1_ref, b1_ref, w2_ref, b2_ref, o_ref):
    x = x_ref[...]                        # (2, TB)  batch on lanes
    w1 = w1_ref[...]                      # (8, 2)   PyTorch (out, in) layout
    # Layer 1: K=2 is far too small for the MXU -> two VPU broadcast FMAs.
    h = (w1[:, 0:1] * x[0:1, :]           # (8,1)*(1,TB) -> (8,TB)
         + w1[:, 1:2] * x[1:2, :]
         + b1_ref[...])                   # (8,1) broadcast across lanes
    h = jnp.maximum(h, 0.0)
    # Layer 2: (1,8)@(8,TB) as a weighted sublane reduction, scalar bias from
    # SMEM.  Single lane-dense (1, TB) store per step.
    o_ref[...] = jnp.sum(w2_ref[...] * h, axis=0, keepdims=True) + b2_ref[0]


@functools.partial(jax.jit, static_argnames=("tile_b",))
def my_neural_net(x, w1, b1, w2, b2, *, tile_b=256):
    """Forward pass of MyNeuralNet.

    x : (B, 2) f32
    w1: (8, 2) f32   (nn.Linear(2, 8).weight layout)
    b1: (8,)   f32
    w2: (1, 8) f32   (nn.Linear(8, 1).weight layout)
    b2: (1,)   f32
    returns (B, 1) f32
    """
    B = x.shape[0]
    n_tiles = max(1, pl.cdiv(B, tile_b))
    bp = n_tiles * tile_b
    # Batch -> lanes.  Pad batch up to a multiple of the lane tile; the padded
    # columns are computed and dropped (keeps every block (8,128)-legal).
    x_t = jnp.zeros((2, bp), jnp.float32).at[:, :B].set(x.T)

    b1c = b1.reshape(8, 1)
    w2c = w2.reshape(8, 1)

    out_t = pl.pallas_call(
        mlp_kernel,
        out_shape=jax.ShapeDtypeStruct((1, bp), jnp.float32),
        grid=(n_tiles,),
        in_specs=[
            pl.BlockSpec((2, tile_b), lambda i: (0, i)),   # x tile, pipelined
            pl.BlockSpec((8, 2), lambda i: (0, 0)),        # W1 resident in VMEM
            pl.BlockSpec((8, 1), lambda i: (0, 0)),        # b1 resident in VMEM
            pl.BlockSpec((8, 1), lambda i: (0, 0)),        # W2 resident in VMEM
            pl.BlockSpec(memory_space=pltpu.SMEM),         # b2 scalar in SMEM
        ],
        out_specs=pl.BlockSpec((1, tile_b), lambda i: (0, i)),
        compiler_params=pltpu.CompilerParams(
            dimension_semantics=("parallel",),   # megacore-shard batch on v7x
        ),
    )(x_t, w1, b1c, w2c, b2)

    return out_t[0, :B].reshape(B, 1)


def reference(x, w1, b1, w2, b2):
    h = jnp.maximum(x @ w1.T + b1, 0.0)
    return h @ w2.T + b2


def init_params(key):
    """Deterministic init mimicking nn.Linear's U(-1/sqrt(fan_in), +1/sqrt(fan_in))."""
    k1, k2, k3, k4 = jax.random.split(key, 4)
    fan1, hid, out = 2, 8, 1
    bound1 = 1.0 / jnp.sqrt(fan1)
    bound2 = 1.0 / jnp.sqrt(hid)
    w1 = jax.random.uniform(k1, (hid, fan1), jnp.float32, -bound1, bound1)
    b1 = jax.random.uniform(k2, (hid,), jnp.float32, -bound1, bound1)
    w2 = jax.random.uniform(k3, (out, hid), jnp.float32, -bound2, bound2)
    b2 = jax.random.uniform(k4, (out,), jnp.float32, -bound2, bound2)
    return w1, b1, w2, b2


if __name__ == "__main__":
    key = jax.random.PRNGKey(0)
    w1, b1, w2, b2 = init_params(key)

    # Same data as the PyTorch script: x = [[1,2],[3,4],[5,6],[7,8]]
    x_small = jnp.array([[1.0, 2.0], [3.0, 4.0], [5.0, 6.0], [7.0, 8.0]],
                        dtype=jnp.float32)
    out_small = my_neural_net(x_small, w1, b1, w2, b2)
    jax.block_until_ready(out_small)
    assert out_small.shape == (4, 1)
    assert jnp.allclose(out_small, reference(x_small, w1, b1, w2, b2),
                        atol=1e-5, rtol=1e-5)

    # Larger batch to exercise the pipelined "parallel" batch grid (4 tiles).
    x_big = jax.random.normal(jax.random.PRNGKey(1), (1024, 2), jnp.float32)
    out_big = my_neural_net(x_big, w1, b1, w2, b2)
    jax.block_until_ready(out_big)
    assert out_big.shape == (1024, 1)
    assert jnp.allclose(out_big, reference(x_big, w1, b1, w2, b2),
                        atol=1e-5, rtol=1e-5)

    print("KERNEL_OK")
</pallas_src>

<mosaic_0001>
module attributes {stable_mosaic.version = 11 : i64} {
  func.func @mlp_kernel(%arg0: i32, %arg1: memref<2x256xf32, #tpu.memory_space<vmem>>, %arg2: memref<8x2xf32, #tpu.memory_space<vmem>>, %arg3: memref<8x1xf32, #tpu.memory_space<vmem>>, %arg4: memref<8x1xf32, #tpu.memory_space<vmem>>, %arg5: memref<1xf32, #tpu.memory_space<smem>>, %arg6: memref<1x256xf32, #tpu.memory_space<vmem>>) attributes {dimension_semantics = [#tpu.dimension_semantics<parallel>], iteration_bounds = array<i64: 1>, scalar_prefetch = 0 : i64, scratch_operands = 0 : i64, tpu.core_type = #tpu.core_type<tc>, window_params = [{transform_indices = @transform_0, window_bounds = array<i64: 2, 256>}, {pipeline_mode = #tpu.pipeline_mode<synchronous>, transform_indices = @transform_1, window_bounds = array<i64: 8, 2>}, {pipeline_mode = #tpu.pipeline_mode<synchronous>, transform_indices = @transform_2, window_bounds = array<i64: 8, 1>}, {pipeline_mode = #tpu.pipeline_mode<synchronous>, transform_indices = @transform_3, window_bounds = array<i64: 8, 1>}, {transform_indices = @transform_4, window_bounds = array<i64: 1>}, {transform_indices = @transform_5, window_bounds = array<i64: 1, 256>}]} {
    %c0 = arith.constant 0 : index
    %c0_0 = arith.constant 0 : index
    %0 = vector.load %arg1[%c0, %c0_0] : memref<2x256xf32, #tpu.memory_space<vmem>>, vector<2x256xf32>
    %c0_1 = arith.constant 0 : index
    %c0_2 = arith.constant 0 : index
    %1 = vector.load %arg2[%c0_1, %c0_2] : memref<8x2xf32, #tpu.memory_space<vmem>>, vector<8x2xf32>
    %2 = vector.extract_strided_slice %1 {offsets = [0, 0], sizes = [8, 1], strides = [1, 1]} : vector<8x2xf32> to vector<8x1xf32>
    %3 = vector.extract_strided_slice %0 {offsets = [0, 0], sizes = [1, 256], strides = [1, 1]} : vector<2x256xf32> to vector<1x256xf32>
    %4 = vector.broadcast %2 : vector<8x1xf32> to vector<8x256xf32>
    %5 = vector.broadcast %3 : vector<1x256xf32> to vector<8x256xf32>
    %6 = arith.mulf %4, %5 : vector<8x256xf32>
    %7 = vector.extract_strided_slice %1 {offsets = [0, 1], sizes = [8, 1], strides = [1, 1]} : vector<8x2xf32> to vector<8x1xf32>
    %8 = vector.extract_strided_slice %0 {offsets = [1, 0], sizes = [1, 256], strides = [1, 1]} : vector<2x256xf32> to vector<1x256xf32>
    %9 = vector.broadcast %7 : vector<8x1xf32> to vector<8x256xf32>
    %10 = vector.broadcast %8 : vector<1x256xf32> to vector<8x256xf32>
    %11 = arith.mulf %9, %10 : vector<8x256xf32>
    %12 = arith.addf %6, %11 : vector<8x256xf32>
    %c0_3 = arith.constant 0 : index
    %c0_4 = arith.constant 0 : index
    %13 = vector.load %arg3[%c0_3, %c0_4] : memref<8x1xf32, #tpu.memory_space<vmem>>, vector<8x1xf32>
    %14 = vector.broadcast %13 : vector<8x1xf32> to vector<8x256xf32>
    %15 = arith.addf %12, %14 : vector<8x256xf32>
    %cst = arith.constant 0.000000e+00 : f32
    %16 = vector.broadcast %cst : f32 to vector<8x256xf32>
    %17 = arith.maximumf %15, %16 : vector<8x256xf32>
    %c0_5 = arith.constant 0 : index
    %c0_6 = arith.constant 0 : index
    %18 = vector.load %arg4[%c0_5, %c0_6] : memref<8x1xf32, #tpu.memory_space<vmem>>, vector<8x1xf32>
    %19 = vector.broadcast %18 : vector<8x1xf32> to vector<8x256xf32>
    %20 = arith.mulf %19, %17 : vector<8x256xf32>
    %cst_7 = arith.constant dense<0.000000e+00> : vector<256xf32>
    %21 = vector.multi_reduction <add>, %20, %cst_7 [0] : vector<8x256xf32> to vector<256xf32>
    %22 = vector.shape_cast %21 : vector<256xf32> to vector<1x256xf32>
    %c0_8 = arith.constant 0 : index
    %23 = memref.load %arg5[%c0_8] : memref<1xf32, #tpu.memory_space<smem>>
    %24 = vector.broadcast %23 : f32 to vector<1x256xf32>
    %25 = arith.addf %22, %24 : vector<1x256xf32>
    %c0_9 = arith.constant 0 : index
    %c0_10 = arith.constant 0 : index
    %26 = vector.load %arg6[%c0_9, %c0_10] : memref<1x256xf32, #tpu.memory_space<vmem>>, vector<1x256xf32>
    tpu.vector_store %arg6[%c0_9, %c0_10], %25 {strides = array<i32>} : memref<1x256xf32, #tpu.memory_space<vmem>>, vector<1x256xf32>,
    return
  }
  func.func @transform_0(%arg0: i32) -> (i32, i32) {
    %c0_i32 = arith.constant 0 : i32
    %c0_i32_0 = arith.constant 0 : i32
    return %c0_i32, %arg0 : i32, i32
  }
  func.func @transform_1(%arg0: i32) -> (i32, i32) {
    %c0_i32 = arith.constant 0 : i32
    %c0_i32_0 = arith.constant 0 : i32
    %c0_i32_1 = arith.constant 0 : i32
    return %c0_i32, %c0_i32_0 : i32, i32
  }
  func.func @transform_2(%arg0: i32) -> (i32, i32) {
    %c0_i32 = arith.constant 0 : i32
    %c0_i32_0 = arith.constant 0 : i32
    %c0_i32_1 = arith.constant 0 : i32
    return %c0_i32, %c0_i32_0 : i32, i32
  }
  func.func @transform_3(%arg0: i32) -> (i32, i32) {
    %c0_i32 = arith.constant 0 : i32
    %c0_i32_0 = arith.constant 0 : i32
    %c0_i32_1 = arith.constant 0 : i32
    return %c0_i32, %c0_i32_0 : i32, i32
  }
  func.func @transform_4(%arg0: i32) -> i32 {
    %c0_i32 = arith.constant 0 : i32
    %c0_i32_0 = arith.constant 0 : i32
    return %c0_i32 : i32
  }
  func.func @transform_5(%arg0: i32) -> (i32, i32) {
    %c0_i32 = arith.constant 0 : i32
    %c0_i32_0 = arith.constant 0 : i32
    return %c0_i32, %arg0 : i32, i32
  }
}

</mosaic_0001>

<bundles_post_ra>
// kernel: my_neural_net.1
= control target key start
LH: loop header
LB: loop body
LE: loop exit
PB: predicated region body
PF: predicated region fallthrough
CT: control target
= control target key end

     0   :  { %v106_v0 = vmov 0   ;;  %v107_v4 = vmov 1   ;;  %v91_v41 = vlaneseq  ;;  %vm88_vm0 = vcmask 1040384   ;;  %s156_s1 = inlined_call_operand.vmem [shape: f32[8,2], index: 1, kind: input, shape index: {}]   ;;  %s157_s2 = inlined_call_operand.vmem [shape: f32[8,1], index: 2, kind: input, shape index: {}]   ;;  %s158_s3 = inlined_call_operand.vmem [shape: f32[8,1], index: 3, kind: input, shape index: {}]   ;;  %s159_s0 = inlined_call_operand.vmem [shape: f32[2,256], index: 0, kind: input, shape index: {}]   ;;  %s160_s4 = inlined_call_operand.<no memory space> [shape: f32[1], index: 4, kind: input, shape index: {}]   ;;  %s161_s5 = inlined_call_operand.vmem [shape: f32[1,256], index: 5, kind: output, shape index: {}]  }
   0x1   :  { %102 = vset.pattern.permute.xlu0 %v106_v0  ;;  %104 = vset.pattern.permute.xlu1 %v106_v0  ;;  %v22_v1 = vld [vmem:[%s156_s1] sm:$0xff]  ;;  %v82_v40 = vstv %s160_s4 }
   0x2   :  { %v51_v2 = vld [vmem:[%s157_s2] sm:$0xff]  ;;  %25 = vperm.xlu0 %102, %v22_v1   ;;  %vm93_vm1 = vcmp.lt.s32.totalorder %v91_v41, 256 }
   0x3   :  { %54 = vperm.xlu1 %104, %v51_v2   ;;  %v61_v3 = vld [vmem:[%s158_s3] sm:$0xff] }
   0x4   :  { %v21_v5 = vld [vmem:[%s159_s0] sm:$0xf] }
   0x5   :  { %v29_v7 = vperm.slane %v21_v5, 0  ;;  %v30_v8 = vperm.slane %v21_v5, 2  ;;  %v41_v9 = vperm.slane %v21_v5, 1  ;;  %v42_v10 = vperm.slane %v21_v5, 3 }
   0x7   :  { %v33_v11 = vperm.slane %v29_v7, 0  ;;  %v34_v12 = vperm.slane %v30_v8, 0  ;;  %v45_v13 = vperm.slane %v41_v9, 1  ;;  %v46_v14 = vperm.slane %v42_v10, 1 }
   0xa   :  { %103 = vset.pattern.permute.xlu0 %v107_v4 }
   0xb   :  { %64 = vperm.xlu1 %104, %v61_v3   ;;  %38 = vperm.xlu0 %103, %v22_v1  }
  0x13   :  { %105 = vset.pattern.permute.xlu0 %v106_v0 }
  0x74   :  { %v26_v6 = vpop.permute.xlu0 %25 }
  0x75   :  { %v55_v15 = vpop.permute.xlu1 %54  ;;  %v35_v17 = vmul.f32 %v33_v11, %v26_v6  ;;  %v36_v18 = vmul.f32 %v34_v12, %v26_v6 }
  0x7d   :  { %v39_v16 = vpop.permute.xlu0 %38  ;;  %v65_v27 = vpop.permute.xlu1 %64 }
  0x7e   :  { %v47_v19 = vmul.f32 %v45_v13, %v39_v16  ;;  %v48_v20 = vmul.f32 %v46_v14, %v39_v16 }
  0x80   :  { %v49_v21 = vadd.f32 %v47_v19, %v35_v17  ;;  %v50_v22 = vadd.f32 %v48_v20, %v36_v18 }
  0x82   :  { %v57_v23 = vadd.f32 %v55_v15, %v49_v21  ;;  %v58_v24 = vadd.f32 %v55_v15, %v50_v22 }
  0x84   :  { %v59_v25 = vmax.f32 %v57_v23, 0.0  ;;  %v60_v26 = vmax.f32 %v58_v24, 0.0 }
  0x86   :  { %v67_v28 = vmul.f32 %v65_v27, %v59_v25  ;;  %v68_v29 = vmul.f32 %v65_v27, %v60_v26 }
  0x88   :  { %v69_v30 = vrot.slane %v67_v28, 4  ;;  %v75_v31 = vrot.slane %v68_v29, 4 }
  0x8a   :  { %v70_v32 = vadd.f32 %v69_v30, %v67_v28  ;;  %v76_v33 = vadd.f32 %v75_v31, %v68_v29 }
  0x8c   :  { %v71_v34 = vrot.slane %v70_v32, 2  ;;  %v77_v35 = vrot.slane %v76_v33, 2 }
  0x8e   :  { %v72_v36 = vadd.f32 %v71_v34, %v70_v32  ;;  %v78_v37 = vadd.f32 %v77_v35, %v76_v33 }
  0x90   :  { %v73_v38 = vrot.slane %v72_v36, 1  ;;  %v79_v39 = vrot.slane %v78_v37, 1 }
  0x92   :  { %v74_v42 = vadd.f32 %v73_v38, %v72_v36  ;;  %v80_v43 = vadd.f32 %v79_v39, %v78_v37 }
  0x94   :  { %v84_v44 = vadd.f32 %v82_v40, %v80_v43  ;;  %v83_v45 = vadd.f32 %v82_v40, %v74_v42 }
  0x96   :  { %v87_v46 = vrot.slane %v84_v44, 7 }
  0x98   :  { %v89_v47 = vsel %vm88_vm0, %v83_v45, %v87_v46 }
  0x99   :  { %95 = vst.msk [vmem:[%s161_s5] sm:$0x3] %vm93_vm1, %v89_v47 }

</bundles_post_ra>
